<compile_context>
chip_gen: v5e
topology: v5e:2x2
jax: 0.10.0
libtpu: 0.0.40
codegen_flags: <defaults>
</compile_context>

<pallas_src>
import jax
import jax.numpy as jnp
from jax import lax
from jax.experimental import pallas as pl
from jax.experimental.pallas import tpu as pltpu


def rnn_kernel(tok_ref,      # SMEM (B, S) int32  -- scalar-prefetched token ids
               wihb_ref,     # VMEM (V, H) f32    -- W_ih^T with (b_ih + b_hh) pre-added
               whh_ref,      # VMEM (H, H) f32    -- W_hh^T
               h0_ref,       # VMEM (B, H) f32
               wd_ref,       # VMEM (H, C) f32    -- W_dense^T
               bd_ref,       # VMEM (1, C) f32
               out_ref,      # VMEM (B, C) f32    -- logits
               hN_ref):      # VMEM (B, H) f32    -- final hidden state
    B, S = tok_ref.shape
    inv_S = 1.0 / S                       # trace-time Python constant (no .astype)

    whh = whh_ref[...]                    # recurrent weight stays resident across steps

    def step(t, carry):
        h, hsum = carry
        # Embedding lookup == one_hot(tok) @ W_ih^T : gather one (1, H) row per batch
        # element from the bias-folded table.  B is small & static -> unrolled gathers.
        rows = [wihb_ref[pl.ds(tok_ref[b, t], 1), :] for b in range(B)]
        x_t = jnp.concatenate(rows, axis=0)                       # (B, H)
        h_new = jnp.tanh(
            x_t + jnp.dot(h, whh, preferred_element_type=jnp.float32))
        return h_new, hsum + h_new

    h0 = h0_ref[...]
    h_final, hsum = lax.fori_loop(0, S, step, (h0, jnp.zeros_like(h0)),
                                  unroll=True)

    y_mean = hsum * inv_S                 # mean over time
    # dropout (eval) is identity; dense: y_mean @ W_d^T + b_d
    out_ref[...] = (jnp.dot(y_mean, wd_ref[...],
                            preferred_element_type=jnp.float32)
                    + bd_ref[...])
    hN_ref[...] = h_final


def rnn_model_forward(tokens, h0, params, *, vocab_size):
    """tokens: (batch, seq) int32; h0: (1, batch, hidden) f32.
    Returns (logits (batch, n_class), state (1, batch, hidden))."""
    W_ih, W_hh, b_ih, b_hh, W_d, b_d = (params[k] for k in
                                        ("W_ih", "W_hh", "b_ih", "b_hh", "W_d", "b_d"))
    B, S = tokens.shape
    H = W_hh.shape[0]
    C = W_d.shape[0]
    V = vocab_size

    # Fold both RNN biases into the embedding table: each gathered row already
    # carries b_ih + b_hh.  No one-hot tensor is ever materialized.
    wihb = W_ih.T + (b_ih + b_hh)[None, :]        # (V, H)
    whh_t = W_hh.T                                # (H, H)
    wd_t = W_d.T                                  # (H, C)
    bd = b_d.reshape(1, C)
    h0_2d = h0.reshape(B, H)
    tokens = tokens.astype(jnp.int32)

    full = lambda shape: pl.BlockSpec(shape, lambda i, tok: (0, 0))

    logits, h_final = pl.pallas_call(
        rnn_kernel,
        out_shape=(jax.ShapeDtypeStruct((B, C), jnp.float32),
                   jax.ShapeDtypeStruct((B, H), jnp.float32)),
        grid_spec=pltpu.PrefetchScalarGridSpec(
            num_scalar_prefetch=1,                # token ids -> SMEM
            grid=(1,),                            # single step; time loop is in-kernel
            in_specs=[
                full((V, H)),                     # W_ih^T + (b_ih + b_hh)
                full((H, H)),                     # W_hh^T
                full((B, H)),                     # h0
                full((H, C)),                     # W_dense^T
                full((1, C)),                     # b_dense
            ],
            out_specs=[full((B, C)), full((B, H))],
        ),
        compiler_params=pltpu.CompilerParams(
            dimension_semantics=("arbitrary",)),
    )(tokens, wihb, whh_t, h0_2d, wd_t, bd)

    return logits, h_final.reshape(1, B, H)


def init_params(key, vocab_size, hidden_size, n_class):
    """Deterministic init matching the PyTorch module's parameter shapes."""
    ks = jax.random.split(key, 6)
    k_rnn = 1.0 / jnp.sqrt(hidden_size)
    u = lambda k, shape, bound: jax.random.uniform(k, shape, jnp.float32, -bound, bound)
    return {
        "W_ih": u(ks[0], (hidden_size, vocab_size), k_rnn),
        "W_hh": u(ks[1], (hidden_size, hidden_size), k_rnn),
        "b_ih": u(ks[2], (hidden_size,), k_rnn),
        "b_hh": u(ks[3], (hidden_size,), k_rnn),
        "W_d":  u(ks[4], (n_class, hidden_size), k_rnn),
        "b_d":  u(ks[5], (n_class,), k_rnn),
    }


if __name__ == "__main__":
    # small shapes consistent with the module's forward
    batch, seq = 2, 8
    vocab_size = 16
    hidden = 32
    n_class = 10

    key = jax.random.PRNGKey(0)
    k_tok, k_h0, k_p = jax.random.split(key, 3)

    tokens = jax.random.randint(k_tok, (batch, seq), 0, vocab_size, dtype=jnp.int32)
    h0 = jax.random.normal(k_h0, (1, batch, hidden), dtype=jnp.float32)
    params = init_params(k_p, vocab_size, hidden, n_class)

    logits, state = rnn_model_forward(tokens, h0, params, vocab_size=vocab_size)
    jax.block_until_ready((logits, state))

    # reference check in plain JAX (same math as the PyTorch module)
    x = jax.nn.one_hot(tokens.T, vocab_size, dtype=jnp.float32)   # (seq, batch, vocab)
    h = h0[0]
    ys = []
    for t in range(seq):
        h = jnp.tanh(x[t] @ params["W_ih"].T + params["b_ih"]
                     + h @ params["W_hh"].T + params["b_hh"])
        ys.append(h)
    y_mean = jnp.stack(ys).mean(axis=0)
    ref_logits = y_mean @ params["W_d"].T + params["b_d"]
    assert jnp.allclose(logits, ref_logits, atol=1e-5, rtol=1e-5)
    assert jnp.allclose(state[0], h, atol=1e-5, rtol=1e-5)
    assert logits.shape == (batch, n_class) and state.shape == (1, batch, hidden)

    print("KERNEL_OK")
</pallas_src>

<mosaic_0001>
module attributes {stable_mosaic.version = 11 : i64} {
  func.func @rnn_kernel(%arg0: i32, %arg1: memref<2x8xi32, #tpu.memory_space<smem>>, %arg2: memref<16x32xf32, #tpu.memory_space<vmem>>, %arg3: memref<32x32xf32, #tpu.memory_space<vmem>>, %arg4: memref<2x32xf32, #tpu.memory_space<vmem>>, %arg5: memref<32x10xf32, #tpu.memory_space<vmem>>, %arg6: memref<1x10xf32, #tpu.memory_space<vmem>>, %arg7: memref<2x10xf32, #tpu.memory_space<vmem>>, %arg8: memref<2x32xf32, #tpu.memory_space<vmem>>) attributes {dimension_semantics = [#tpu.dimension_semantics<arbitrary>], iteration_bounds = array<i64: 1>, scalar_prefetch = 1 : i64, scratch_operands = 0 : i64, tpu.core_type = #tpu.core_type<tc>, window_params = [{pipeline_mode = #tpu.pipeline_mode<synchronous>, transform_indices = @transform_0, window_bounds = array<i64: 16, 32>}, {pipeline_mode = #tpu.pipeline_mode<synchronous>, transform_indices = @transform_1, window_bounds = array<i64: 32, 32>}, {pipeline_mode = #tpu.pipeline_mode<synchronous>, transform_indices = @transform_2, window_bounds = array<i64: 2, 32>}, {pipeline_mode = #tpu.pipeline_mode<synchronous>, transform_indices = @transform_3, window_bounds = array<i64: 32, 10>}, {pipeline_mode = #tpu.pipeline_mode<synchronous>, transform_indices = @transform_4, window_bounds = array<i64: 1, 10>}, {pipeline_mode = #tpu.pipeline_mode<synchronous>, transform_indices = @transform_5, window_bounds = array<i64: 2, 10>}, {pipeline_mode = #tpu.pipeline_mode<synchronous>, transform_indices = @transform_6, window_bounds = array<i64: 2, 32>}]} {
    %c0 = arith.constant 0 : index
    %c0_0 = arith.constant 0 : index
    %0 = vector.load %arg3[%c0, %c0_0] : memref<32x32xf32, #tpu.memory_space<vmem>>, vector<32x32xf32>
    %c0_1 = arith.constant 0 : index
    %c0_2 = arith.constant 0 : index
    %1 = vector.load %arg4[%c0_1, %c0_2] : memref<2x32xf32, #tpu.memory_space<vmem>>, vector<2x32xf32>
    %cst = arith.constant 0.000000e+00 : f32
    %2 = vector.broadcast %cst : f32 to vector<2x32xf32>
    %c0_i32 = arith.constant 0 : i32
    %c0_3 = arith.constant 0 : index
    %3 = arith.index_cast %c0_i32 : i32 to index
    %4 = memref.load %arg1[%c0_3, %3] : memref<2x8xi32, #tpu.memory_space<smem>>
    %5 = arith.index_cast %4 : i32 to index
    %c0_4 = arith.constant 0 : index
    %6 = vector.load %arg2[%5, %c0_4] : memref<16x32xf32, #tpu.memory_space<vmem>>, vector<1x32xf32>
    %c1 = arith.constant 1 : index
    %7 = arith.index_cast %c0_i32 : i32 to index
    %8 = memref.load %arg1[%c1, %7] : memref<2x8xi32, #tpu.memory_space<smem>>
    %9 = arith.index_cast %8 : i32 to index
    %c0_5 = arith.constant 0 : index
    %10 = vector.load %arg2[%9, %c0_5] : memref<16x32xf32, #tpu.memory_space<vmem>>, vector<1x32xf32>
    %11 = tpu.concatenate %6, %10 in 0 : vector<1x32xf32>, vector<1x32xf32> -> vector<2x32xf32>
    %cst_6 = arith.constant dense<0.000000e+00> : vector<2x32xf32>
    %12 = tpu.matmul %1, %0, %cst_6 {dimension_numbers = #tpu.dot_dimension_numbers<[1], [0], [0], [1], [0, 0, 1, 1], [], []>} : vector<2x32xf32>, vector<32x32xf32>, vector<2x32xf32> -> vector<2x32xf32>
    %13 = arith.addf %11, %12 : vector<2x32xf32>
    %14 = math.tanh %13 : vector<2x32xf32>
    %15 = arith.addf %2, %14 : vector<2x32xf32>
    %c1_i32 = arith.constant 1 : i32
    %c0_7 = arith.constant 0 : index
    %16 = arith.index_cast %c1_i32 : i32 to index
    %17 = memref.load %arg1[%c0_7, %16] : memref<2x8xi32, #tpu.memory_space<smem>>
    %18 = arith.index_cast %17 : i32 to index
    %c0_8 = arith.constant 0 : index
    %19 = vector.load %arg2[%18, %c0_8] : memref<16x32xf32, #tpu.memory_space<vmem>>, vector<1x32xf32>
    %c1_9 = arith.constant 1 : index
    %20 = arith.index_cast %c1_i32 : i32 to index
    %21 = memref.load %arg1[%c1_9, %20] : memref<2x8xi32, #tpu.memory_space<smem>>
    %22 = arith.index_cast %21 : i32 to index
    %c0_10 = arith.constant 0 : index
    %23 = vector.load %arg2[%22, %c0_10] : memref<16x32xf32, #tpu.memory_space<vmem>>, vector<1x32xf32>
    %24 = tpu.concatenate %19, %23 in 0 : vector<1x32xf32>, vector<1x32xf32> -> vector<2x32xf32>
    %cst_11 = arith.constant dense<0.000000e+00> : vector<2x32xf32>
    %25 = tpu.matmul %14, %0, %cst_11 {dimension_numbers = #tpu.dot_dimension_numbers<[1], [0], [0], [1], [0, 0, 1, 1], [], []>} : vector<2x32xf32>, vector<32x32xf32>, vector<2x32xf32> -> vector<2x32xf32>
    %26 = arith.addf %24, %25 : vector<2x32xf32>
    %27 = math.tanh %26 : vector<2x32xf32>
    %28 = arith.addf %15, %27 : vector<2x32xf32>
    %c2_i32 = arith.constant 2 : i32
    %c0_12 = arith.constant 0 : index
    %29 = arith.index_cast %c2_i32 : i32 to index
    %30 = memref.load %arg1[%c0_12, %29] : memref<2x8xi32, #tpu.memory_space<smem>>
    %31 = arith.index_cast %30 : i32 to index
    %c0_13 = arith.constant 0 : index
    %32 = vector.load %arg2[%31, %c0_13] : memref<16x32xf32, #tpu.memory_space<vmem>>, vector<1x32xf32>
    %c1_14 = arith.constant 1 : index
    %33 = arith.index_cast %c2_i32 : i32 to index
    %34 = memref.load %arg1[%c1_14, %33] : memref<2x8xi32, #tpu.memory_space<smem>>
    %35 = arith.index_cast %34 : i32 to index
    %c0_15 = arith.constant 0 : index
    %36 = vector.load %arg2[%35, %c0_15] : memref<16x32xf32, #tpu.memory_space<vmem>>, vector<1x32xf32>
    %37 = tpu.concatenate %32, %36 in 0 : vector<1x32xf32>, vector<1x32xf32> -> vector<2x32xf32>
    %cst_16 = arith.constant dense<0.000000e+00> : vector<2x32xf32>
    %38 = tpu.matmul %27, %0, %cst_16 {dimension_numbers = #tpu.dot_dimension_numbers<[1], [0], [0], [1], [0, 0, 1, 1], [], []>} : vector<2x32xf32>, vector<32x32xf32>, vector<2x32xf32> -> vector<2x32xf32>
    %39 = arith.addf %37, %38 : vector<2x32xf32>
    %40 = math.tanh %39 : vector<2x32xf32>
    %41 = arith.addf %28, %40 : vector<2x32xf32>
    %c3_i32 = arith.constant 3 : i32
    %c0_17 = arith.constant 0 : index
    %42 = arith.index_cast %c3_i32 : i32 to index
    %43 = memref.load %arg1[%c0_17, %42] : memref<2x8xi32, #tpu.memory_space<smem>>
    %44 = arith.index_cast %43 : i32 to index
    %c0_18 = arith.constant 0 : index
    %45 = vector.load %arg2[%44, %c0_18] : memref<16x32xf32, #tpu.memory_space<vmem>>, vector<1x32xf32>
    %c1_19 = arith.constant 1 : index
    %46 = arith.index_cast %c3_i32 : i32 to index
    %47 = memref.load %arg1[%c1_19, %46] : memref<2x8xi32, #tpu.memory_space<smem>>
    %48 = arith.index_cast %47 : i32 to index
    %c0_20 = arith.constant 0 : index
    %49 = vector.load %arg2[%48, %c0_20] : memref<16x32xf32, #tpu.memory_space<vmem>>, vector<1x32xf32>
    %50 = tpu.concatenate %45, %49 in 0 : vector<1x32xf32>, vector<1x32xf32> -> vector<2x32xf32>
    %cst_21 = arith.constant dense<0.000000e+00> : vector<2x32xf32>
    %51 = tpu.matmul %40, %0, %cst_21 {dimension_numbers = #tpu.dot_dimension_numbers<[1], [0], [0], [1], [0, 0, 1, 1], [], []>} : vector<2x32xf32>, vector<32x32xf32>, vector<2x32xf32> -> vector<2x32xf32>
    %52 = arith.addf %50, %51 : vector<2x32xf32>
    %53 = math.tanh %52 : vector<2x32xf32>
    %54 = arith.addf %41, %53 : vector<2x32xf32>
    %c4_i32 = arith.constant 4 : i32
    %c0_22 = arith.constant 0 : index
    %55 = arith.index_cast %c4_i32 : i32 to index
    %56 = memref.load %arg1[%c0_22, %55] : memref<2x8xi32, #tpu.memory_space<smem>>
    %57 = arith.index_cast %56 : i32 to index
    %c0_23 = arith.constant 0 : index
    %58 = vector.load %arg2[%57, %c0_23] : memref<16x32xf32, #tpu.memory_space<vmem>>, vector<1x32xf32>
    %c1_24 = arith.constant 1 : index
    %59 = arith.index_cast %c4_i32 : i32 to index
    %60 = memref.load %arg1[%c1_24, %59] : memref<2x8xi32, #tpu.memory_space<smem>>
    %61 = arith.index_cast %60 : i32 to index
    %c0_25 = arith.constant 0 : index
    %62 = vector.load %arg2[%61, %c0_25] : memref<16x32xf32, #tpu.memory_space<vmem>>, vector<1x32xf32>
    %63 = tpu.concatenate %58, %62 in 0 : vector<1x32xf32>, vector<1x32xf32> -> vector<2x32xf32>
    %cst_26 = arith.constant dense<0.000000e+00> : vector<2x32xf32>
    %64 = tpu.matmul %53, %0, %cst_26 {dimension_numbers = #tpu.dot_dimension_numbers<[1], [0], [0], [1], [0, 0, 1, 1], [], []>} : vector<2x32xf32>, vector<32x32xf32>, vector<2x32xf32> -> vector<2x32xf32>
    %65 = arith.addf %63, %64 : vector<2x32xf32>
    %66 = math.tanh %65 : vector<2x32xf32>
    %67 = arith.addf %54, %66 : vector<2x32xf32>
    %c5_i32 = arith.constant 5 : i32
    %c0_27 = arith.constant 0 : index
    %68 = arith.index_cast %c5_i32 : i32 to index
    %69 = memref.load %arg1[%c0_27, %68] : memref<2x8xi32, #tpu.memory_space<smem>>
    %70 = arith.index_cast %69 : i32 to index
    %c0_28 = arith.constant 0 : index
    %71 = vector.load %arg2[%70, %c0_28] : memref<16x32xf32, #tpu.memory_space<vmem>>, vector<1x32xf32>
    %c1_29 = arith.constant 1 : index
    %72 = arith.index_cast %c5_i32 : i32 to index
    %73 = memref.load %arg1[%c1_29, %72] : memref<2x8xi32, #tpu.memory_space<smem>>
    %74 = arith.index_cast %73 : i32 to index
    %c0_30 = arith.constant 0 : index
    %75 = vector.load %arg2[%74, %c0_30] : memref<16x32xf32, #tpu.memory_space<vmem>>, vector<1x32xf32>
    %76 = tpu.concatenate %71, %75 in 0 : vector<1x32xf32>, vector<1x32xf32> -> vector<2x32xf32>
    %cst_31 = arith.constant dense<0.000000e+00> : vector<2x32xf32>
    %77 = tpu.matmul %66, %0, %cst_31 {dimension_numbers = #tpu.dot_dimension_numbers<[1], [0], [0], [1], [0, 0, 1, 1], [], []>} : vector<2x32xf32>, vector<32x32xf32>, vector<2x32xf32> -> vector<2x32xf32>
    %78 = arith.addf %76, %77 : vector<2x32xf32>
    %79 = math.tanh %78 : vector<2x32xf32>
    %80 = arith.addf %67, %79 : vector<2x32xf32>
    %c6_i32 = arith.constant 6 : i32
    %c0_32 = arith.constant 0 : index
    %81 = arith.index_cast %c6_i32 : i32 to index
    %82 = memref.load %arg1[%c0_32, %81] : memref<2x8xi32, #tpu.memory_space<smem>>
    %83 = arith.index_cast %82 : i32 to index
    %c0_33 = arith.constant 0 : index
    %84 = vector.load %arg2[%83, %c0_33] : memref<16x32xf32, #tpu.memory_space<vmem>>, vector<1x32xf32>
    %c1_34 = arith.constant 1 : index
    %85 = arith.index_cast %c6_i32 : i32 to index
    %86 = memref.load %arg1[%c1_34, %85] : memref<2x8xi32, #tpu.memory_space<smem>>
    %87 = arith.index_cast %86 : i32 to index
    %c0_35 = arith.constant 0 : index
    %88 = vector.load %arg2[%87, %c0_35] : memref<16x32xf32, #tpu.memory_space<vmem>>, vector<1x32xf32>
    %89 = tpu.concatenate %84, %88 in 0 : vector<1x32xf32>, vector<1x32xf32> -> vector<2x32xf32>
    %cst_36 = arith.constant dense<0.000000e+00> : vector<2x32xf32>
    %90 = tpu.matmul %79, %0, %cst_36 {dimension_numbers = #tpu.dot_dimension_numbers<[1], [0], [0], [1], [0, 0, 1, 1], [], []>} : vector<2x32xf32>, vector<32x32xf32>, vector<2x32xf32> -> vector<2x32xf32>
    %91 = arith.addf %89, %90 : vector<2x32xf32>
    %92 = math.tanh %91 : vector<2x32xf32>
    %93 = arith.addf %80, %92 : vector<2x32xf32>
    %c7_i32 = arith.constant 7 : i32
    %c0_37 = arith.constant 0 : index
    %94 = arith.index_cast %c7_i32 : i32 to index
    %95 = memref.load %arg1[%c0_37, %94] : memref<2x8xi32, #tpu.memory_space<smem>>
    %96 = arith.index_cast %95 : i32 to index
    %c0_38 = arith.constant 0 : index
    %97 = vector.load %arg2[%96, %c0_38] : memref<16x32xf32, #tpu.memory_space<vmem>>, vector<1x32xf32>
    %c1_39 = arith.constant 1 : index
    %98 = arith.index_cast %c7_i32 : i32 to index
    %99 = memref.load %arg1[%c1_39, %98] : memref<2x8xi32, #tpu.memory_space<smem>>
    %100 = arith.index_cast %99 : i32 to index
    %c0_40 = arith.constant 0 : index
    %101 = vector.load %arg2[%100, %c0_40] : memref<16x32xf32, #tpu.memory_space<vmem>>, vector<1x32xf32>
    %102 = tpu.concatenate %97, %101 in 0 : vector<1x32xf32>, vector<1x32xf32> -> vector<2x32xf32>
    %cst_41 = arith.constant dense<0.000000e+00> : vector<2x32xf32>
    %103 = tpu.matmul %92, %0, %cst_41 {dimension_numbers = #tpu.dot_dimension_numbers<[1], [0], [0], [1], [0, 0, 1, 1], [], []>} : vector<2x32xf32>, vector<32x32xf32>, vector<2x32xf32> -> vector<2x32xf32>
    %104 = arith.addf %102, %103 : vector<2x32xf32>
    %105 = math.tanh %104 : vector<2x32xf32>
    %106 = arith.addf %93, %105 : vector<2x32xf32>
    %c8_i32 = arith.constant 8 : i32
    %cst_42 = arith.constant 1.250000e-01 : f32
    %107 = vector.broadcast %cst_42 : f32 to vector<2x32xf32>
    %108 = arith.mulf %106, %107 : vector<2x32xf32>
    %c0_43 = arith.constant 0 : index
    %c0_44 = arith.constant 0 : index
    %109 = vector.load %arg5[%c0_43, %c0_44] : memref<32x10xf32, #tpu.memory_space<vmem>>, vector<32x10xf32>
    %cst_45 = arith.constant dense<0.000000e+00> : vector<2x10xf32>
    %110 = tpu.matmul %108, %109, %cst_45 {dimension_numbers = #tpu.dot_dimension_numbers<[1], [0], [0], [1], [0, 0, 1, 1], [], []>} : vector<2x32xf32>, vector<32x10xf32>, vector<2x10xf32> -> vector<2x10xf32>
    %c0_46 = arith.constant 0 : index
    %c0_47 = arith.constant 0 : index
    %111 = vector.load %arg6[%c0_46, %c0_47] : memref<1x10xf32, #tpu.memory_space<vmem>>, vector<1x10xf32>
    %112 = vector.broadcast %111 : vector<1x10xf32> to vector<2x10xf32>
    %113 = arith.addf %110, %112 : vector<2x10xf32>
    %c0_48 = arith.constant 0 : index
    %c0_49 = arith.constant 0 : index
    %114 = vector.load %arg7[%c0_48, %c0_49] : memref<2x10xf32, #tpu.memory_space<vmem>>, vector<2x10xf32>
    tpu.vector_store %arg7[%c0_48, %c0_49], %113 {strides = array<i32>} : memref<2x10xf32, #tpu.memory_space<vmem>>, vector<2x10xf32>,
    %c0_50 = arith.constant 0 : index
    %c0_51 = arith.constant 0 : index
    %115 = vector.load %arg8[%c0_50, %c0_51] : memref<2x32xf32, #tpu.memory_space<vmem>>, vector<2x32xf32>
    tpu.vector_store %arg8[%c0_50, %c0_51], %105 {strides = array<i32>} : memref<2x32xf32, #tpu.memory_space<vmem>>, vector<2x32xf32>,
    return
  }
  func.func @transform_0(%arg0: i32, %arg1: memref<2x8xi32, #tpu.memory_space<smem>>) -> (i32, i32) {
    %c0_i32 = arith.constant 0 : i32
    %c0_i32_0 = arith.constant 0 : i32
    %c0_i32_1 = arith.constant 0 : i32
    return %c0_i32, %c0_i32_0 : i32, i32
  }
  func.func @transform_1(%arg0: i32, %arg1: memref<2x8xi32, #tpu.memory_space<smem>>) -> (i32, i32) {
    %c0_i32 = arith.constant 0 : i32
    %c0_i32_0 = arith.constant 0 : i32
    %c0_i32_1 = arith.constant 0 : i32
    return %c0_i32, %c0_i32_0 : i32, i32
  }
  func.func @transform_2(%arg0: i32, %arg1: memref<2x8xi32, #tpu.memory_space<smem>>) -> (i32, i32) {
    %c0_i32 = arith.constant 0 : i32
    %c0_i32_0 = arith.constant 0 : i32
    %c0_i32_1 = arith.constant 0 : i32
    return %c0_i32, %c0_i32_0 : i32, i32
  }
  func.func @transform_3(%arg0: i32, %arg1: memref<2x8xi32, #tpu.memory_space<smem>>) -> (i32, i32) {
    %c0_i32 = arith.constant 0 : i32
    %c0_i32_0 = arith.constant 0 : i32
    %c0_i32_1 = arith.constant 0 : i32
    return %c0_i32, %c0_i32_0 : i32, i32
  }
  func.func @transform_4(%arg0: i32, %arg1: memref<2x8xi32, #tpu.memory_space<smem>>) -> (i32, i32) {
    %c0_i32 = arith.constant 0 : i32
    %c0_i32_0 = arith.constant 0 : i32
    %c0_i32_1 = arith.constant 0 : i32
    return %c0_i32, %c0_i32_0 : i32, i32
  }
  func.func @transform_5(%arg0: i32, %arg1: memref<2x8xi32, #tpu.memory_space<smem>>) -> (i32, i32) {
    %c0_i32 = arith.constant 0 : i32
    %c0_i32_0 = arith.constant 0 : i32
    %c0_i32_1 = arith.constant 0 : i32
    return %c0_i32, %c0_i32_0 : i32, i32
  }
  func.func @transform_6(%arg0: i32, %arg1: memref<2x8xi32, #tpu.memory_space<smem>>) -> (i32, i32) {
    %c0_i32 = arith.constant 0 : i32
    %c0_i32_0 = arith.constant 0 : i32
    %c0_i32_1 = arith.constant 0 : i32
    return %c0_i32, %c0_i32_0 : i32, i32
  }
}

</mosaic_0001>

<bundles_post_ra>
// kernel: tpu_custom_call.1
= control target key start
LH: loop header
LB: loop body
LE: loop exit
PB: predicated region body
PF: predicated region fallthrough
CT: control target
= control target key end

     0   :  { %s522_s27 = smov [#allocation3]   ;;  %s669_s0 = inlined_call_operand.hbm [shape: s32[2,8], index: 0, kind: input, shape index: {}]   ;;  %s670_s1 = inlined_call_operand.vmem [shape: f32[16,32], index: 1, kind: input, shape index: {}]   ;;  %s671_s2 = inlined_call_operand.vmem [shape: f32[32,32], index: 2, kind: input, shape index: {}]   ;;  %s672_s3 = inlined_call_operand.vmem [shape: f32[2,32], index: 3, kind: input, shape index: {}]   ;;  %s673_s4 = inlined_call_operand.vmem [shape: f32[32,10], index: 4, kind: input, shape index: {}]   ;;  %s674_s5 = inlined_call_operand.vmem [shape: f32[1,10], index: 5, kind: input, shape index: {}]   ;;  %s675_s6 = inlined_call_operand.hbm [shape: f32[2,10], index: 6, kind: output, shape index: {0}]   ;;  %s676_s7 = inlined_call_operand.hbm [shape: f32[2,32], index: 7, kind: output, shape index: {1}]  }
   0x1   :  { %s14_s26 = sshll.u32 %s669_s0, 4  ;;  %s15_s26 = int_to_ptr.hbm [resolvable:$true] %s14_s26 }
   0x2   :  { %17 = dma.hbm_to_smem %s15_s26, 32, %s522_s27, [#allocation2] }
   0x3   :  { %516 = dma.done.wait [#allocation2], 32 }
   0x4   :  { %517 = vsyncadd [#allocation2], 4294967264 }
   0x5   :  { %20 = sfence }
   0x6   :  { %21 = vsyncpa [#allocation5], 0  ;;  %v36_v0 = vld [vmem:[%s671_s2 + $0x18] sm:$0xff]  ;;  %v35_v1 = vld [vmem:[%s671_s2 + $0x10] sm:$0xff] }
   0x7   :  { %65 = vmatpush.msra.mxu0 %v36_v0  ;;  %101 = vmatpush.msra.mxu1 %v36_v0  ;;  %v34_v2 = vld [vmem:[%s671_s2 + $0x8] sm:$0xff] }
   0x8   :  { %137 = vmatpush.msra.mxu2 %v36_v0  ;;  %173 = vmatpush.msra.mxu3 %v36_v0 }
   0x9   :  { %22 = vsyncpa [#allocation7], 0  ;;  %66 = vmatpush.msra.mxu0 %v35_v1  ;;  %102 = vmatpush.msra.mxu1 %v35_v1  ;;  %v33_v3 = vld [vmem:[%s671_s2] sm:$0xff]  ;;  %vm49_vm0 = vcmask 261120   ;;  %s412_s2 = sld [smem:[#allocation3 + $0x80]]  ;;  %vm47_vm1 = vcmask 1040384  }
   0xa   :  { %138 = vmatpush.msra.mxu2 %v35_v1  ;;  %174 = vmatpush.msra.mxu3 %v35_v1  ;;  %v37_v4 = vld [vmem:[%s672_s3] sm:$0x3]  ;;  %s38_s3 = sld [smem:[#allocation3]]  ;;  %v332_v60 = vld [vmem:[%s673_s4 + $0x18] sm:$0xff]  ;;  %v331_v61 = vld [vmem:[%s673_s4 + $0x10] sm:$0xff]  ;;  %vm362_vm2 = vcmask 254976  }
   0xb   :  { %67 = vmatpush.msra.mxu0 %v34_v2  ;;  %103 = vmatpush.msra.mxu1 %v34_v2  ;;  %s415_s20 = sld [smem:[#allocation3 + $0x81]]  ;;  %v330_v62 = vld [vmem:[%s673_s4 + $0x8] sm:$0xff]  ;;  %v329_v63 = vld [vmem:[%s673_s4] sm:$0xff]  ;;  %s523_s4 = smov [#allocation6]   ;;  %vm360_vm3 = vcmask 74752  }
   0xc   :  { %139 = vmatpush.msra.mxu2 %v34_v2  ;;  %175 = vmatpush.msra.mxu3 %v34_v2  ;;  %s414_s21 = sld [smem:[#allocation3 + $0x1]] }
   0xd   :  { %68 = vmatpush.msra.mxu0 %v33_v3  ;;  %104 = vmatpush.msra.mxu1 %v33_v3  ;;  %s418_s28 = sld [smem:[#allocation3 + $0x82]] }
   0xe   :  { %413 = vmatmul.msk.f32.vlgmr.msra.gmra.mxu0 %vm49_vm0, %v37_v4  ;;  %140 = vmatpush.msra.mxu2 %v33_v3  ;;  %s417_s29 = sld [smem:[#allocation3 + $0x2]] }
   0xf   :  { %176 = vmatpush.msra.mxu3 %v33_v3  ;;  %209 = vmatpush.msrb.mxu0 %v36_v0  ;;  %s42_s16 = scalar_lea.vmem %s670_s1, %s412_s2  ;;  %s421_s12 = sld [smem:[#allocation3 + $0x83]] }
  0x10   :  { %245 = vmatpush.msrb.mxu1 %v36_v0  ;;  %281 = vmatpush.msrb.mxu2 %v36_v0  ;;  %v43_v5 = vld [vmem:[%s42_s16] sm:$0x1]  ;;  %s39_s19 = scalar_lea.vmem %s670_s1, %s38_s3  ;;  %s420_s13 = sld [smem:[#allocation3 + $0x3]] }
  0x11   :  { %210 = vmatpush.msrb.mxu0 %v35_v1  ;;  %317 = vmatpush.msrb.mxu3 %v36_v0  ;;  %v45_v6 = vrot.slane %v43_v5, 7  ;;  %v40_v7 = vld [vmem:[%s39_s19] sm:$0x1]  ;;  %s80_s24 = scalar_lea.vmem %s670_s1, %s415_s20  ;;  %s424_s18 = sld [smem:[#allocation3 + $0x84]] }
  0x12   :  { %246 = vmatpush.msrb.mxu1 %v35_v1  ;;  %282 = vmatpush.msrb.mxu2 %v35_v1  ;;  %v81_v12 = vld [vmem:[%s80_s24] sm:$0x1]  ;;  %s77_s27 = scalar_lea.vmem %s670_s1, %s414_s21  ;;  %s423_s19 = sld [smem:[#allocation3 + $0x4]] }
  0x13   :  { %211 = vmatpush.msrb.mxu0 %v34_v2  ;;  %318 = vmatpush.msrb.mxu3 %v35_v1  ;;  %v48_v8 = vsel %vm47_vm1, %v40_v7, %v45_v6  ;;  %v83_v13 = vrot.slane %v81_v12, 7  ;;  %v78_v14 = vld [vmem:[%s77_s27] sm:$0x1]  ;;  %s116_s9 = scalar_lea.vmem %s670_s1, %s418_s28  ;;  %s427_s26 = sld [smem:[#allocation3 + $0x85]] }
  0x14   :  { %247 = vmatpush.msrb.mxu1 %v34_v2  ;;  %283 = vmatpush.msrb.mxu2 %v34_v2  ;;  %v117_v19 = vld [vmem:[%s116_s9] sm:$0x1]  ;;  %s113_s11 = scalar_lea.vmem %s670_s1, %s417_s29  ;;  %s426_s27 = sld [smem:[#allocation3 + $0x5]] }
  0x15   :  { %212 = vmatpush.msrb.mxu0 %v33_v3  ;;  %319 = vmatpush.msrb.mxu3 %v34_v2  ;;  %v85_v15 = vsel %vm47_vm1, %v78_v14, %v83_v13  ;;  %v119_v20 = vrot.slane %v117_v19, 7  ;;  %v114_v21 = vld [vmem:[%s113_s11] sm:$0x1]  ;;  %s152_s14 = scalar_lea.vmem %s670_s1, %s421_s12  ;;  %s430_s0 = sld [smem:[#allocation3 + $0x86]] }
  0x16   :  { %248 = vmatpush.msrb.mxu1 %v33_v3  ;;  %284 = vmatpush.msrb.mxu2 %v33_v3  ;;  %v153_v28 = vld [vmem:[%s152_s14] sm:$0x1]  ;;  %s149_s17 = scalar_lea.vmem %s670_s1, %s420_s13  ;;  %s429_s11 = sld [smem:[#allocation3 + $0x6]] }
  0x17   :  { %320 = vmatpush.msrb.mxu3 %v33_v3  ;;  %v121_v22 = vsel %vm47_vm1, %v114_v21, %v119_v20  ;;  %v155_v29 = vrot.slane %v153_v28, 7  ;;  %v150_v30 = vld [vmem:[%s149_s17] sm:$0x1]  ;;  %s188_s22 = scalar_lea.vmem %s670_s1, %s424_s18  ;;  %352 = vmatpush.msra.mxu0 %v332_v60  ;;  %s380_s9 = sshll.u32 %s523_s4, 4  ;;  %s381_s9 = int_to_ptr.vmem [resolvable:$true] %s380_s9 }
  0x18   :  { %v189_v36 = vld [vmem:[%s188_s22] sm:$0x1]  ;;  %s185_s25 = scalar_lea.vmem %s670_s1, %s423_s19  ;;  %s433_s22 = sld [smem:[#allocation3 + $0x87]] }
  0x19   :  { %v157_v31 = vsel %vm47_vm1, %v150_v30, %v155_v29  ;;  %v191_v37 = vrot.slane %v189_v36, 7  ;;  %v186_v38 = vld [vmem:[%s185_s25] sm:$0x1]  ;;  %s224_s30 = scalar_lea.vmem %s670_s1, %s427_s26  ;;  %353 = vmatpush.msra.mxu0 %v331_v61  ;;  %s432_s25 = sld [smem:[#allocation3 + $0x7]] }
  0x1a   :  { %v225_v44 = vld [vmem:[%s224_s30] sm:$0x1]  ;;  %s221_s10 = scalar_lea.vmem %s670_s1, %s426_s27  ;;  %s524_s13 = smov [#allocation4]  }
  0x1b   :  { %v193_v39 = vsel %vm47_vm1, %v186_v38, %v191_v37  ;;  %v227_v45 = vrot.slane %v225_v44, 7  ;;  %v222_v46 = vld [vmem:[%s221_s10] sm:$0x1]  ;;  %s260_s2 = scalar_lea.vmem %s670_s1, %s430_s0  ;;  %354 = vmatpush.msra.mxu0 %v330_v62 }
  0x1c   :  { %v261_v52 = vld [vmem:[%s260_s2] sm:$0x1]  ;;  %s257_s15 = scalar_lea.vmem %s670_s1, %s429_s11  ;;  %s369_s2 = sshll.u32 %s524_s13, 4  ;;  %s370_s2 = int_to_ptr.vmem [resolvable:$true] %s369_s2 }
  0x1d   :  { %v229_v47 = vsel %vm47_vm1, %v222_v46, %v227_v45  ;;  %v263_v53 = vrot.slane %v261_v52, 7  ;;  %v258_v54 = vld [vmem:[%s257_s15] sm:$0x1]  ;;  %355 = vmatpush.msra.mxu0 %v329_v63  ;;  %s371_s15 = sshll.u32 %s675_s6, 4  ;;  %s372_s15 = int_to_ptr.hbm [resolvable:$true] %s371_s15 }
  0x1e   :  { %s296_s28 = scalar_lea.vmem %s670_s1, %s433_s22 }
  0x1f   :  { %v265_v55 = vsel %vm47_vm1, %v258_v54, %v263_v53  ;;  %v297_v0 = vld [vmem:[%s296_s28] sm:$0x1]  ;;  %s293_s8 = scalar_lea.vmem %s670_s1, %s432_s25  ;;  %s382_s1 = sshll.u32 %s676_s7, 4  ;;  %s383_s1 = int_to_ptr.hbm [resolvable:$true] %s382_s1 }
  0x20   :  { %v299_v1 = vrot.slane %v297_v0, 7  ;;  %v294_v2 = vld [vmem:[%s293_s8] sm:$0x1] }
  0x22   :  { %v301_v3 = vsel %vm47_vm1, %v294_v2, %v299_v1 }
  0x8b   :  { %v70_v9 = vpop.f32.mrf.mxu0 }
  0x8c   :  { %v73_v10 = vadd.f32 %v70_v9, %v48_v8  ;;  %v439_v9 = vld [vmem:[%s674_s5] ss:$0 sm:$0xff] }
  0x8e   :  { %440 = vtanh.f32 %v73_v10 }
  0x94   :  { %v441_v11 = vpop.eup %440 }
  0x95   :  { %416 = vmatmul.msk.f32.vlgmr.msra.gmra.mxu1 %vm49_vm0, %v441_v11 }
 0x112   :  { %v106_v16 = vpop.f32.mrf.mxu1 }
 0x113   :  { %v109_v17 = vadd.f32 %v106_v16, %v85_v15 }
 0x115   :  { %442 = vtanh.f32 %v109_v17 }
 0x11b   :  { %v443_v18 = vpop.eup %442 }
 0x11c   :  { %419 = vmatmul.msk.f32.vlgmr.msra.gmra.mxu2 %vm49_vm0, %v443_v18  ;;  %v111_v25 = vadd.f32 %v443_v18, %v441_v11 }
 0x19f   :  { %v142_v23 = vpop.f32.mrf.mxu2 }
 0x1a0   :  { %v145_v24 = vadd.f32 %v142_v23, %v121_v22 }
 0x1a2   :  { %444 = vtanh.f32 %v145_v24 }
 0x1a8   :  { %v445_v26 = vpop.eup %444 }
 0x1a9   :  { %v147_v27 = vadd.f32 %v445_v26, %v111_v25  ;;  %422 = vmatmul.msk.f32.vlgmr.msra.gmra.mxu3 %vm49_vm0, %v445_v26 }
 0x22c   :  { %v178_v32 = vpop.f32.mrf.mxu3 }
 0x22d   :  { %v181_v33 = vadd.f32 %v178_v32, %v157_v31 }
 0x22f   :  { %446 = vtanh.f32 %v181_v33 }
 0x235   :  { %v447_v34 = vpop.eup %446 }
 0x236   :  { %v183_v35 = vadd.f32 %v447_v34, %v147_v27  ;;  %425 = vmatmul.msk.f32.vlgmr.msrb.gmra.mxu0 %vm49_vm0, %v447_v34 }
 0x2b3   :  { %v214_v40 = vpop.f32.mrf.mxu0 }
 0x2b4   :  { %v217_v41 = vadd.f32 %v214_v40, %v193_v39 }
 0x2b6   :  { %448 = vtanh.f32 %v217_v41 }
 0x2bc   :  { %v449_v42 = vpop.eup %448 }
 0x2bd   :  { %v219_v43 = vadd.f32 %v449_v42, %v183_v35  ;;  %428 = vmatmul.msk.f32.vlgmr.msrb.gmra.mxu1 %vm49_vm0, %v449_v42 }
 0x33a   :  { %v250_v48 = vpop.f32.mrf.mxu1 }
 0x33b   :  { %v253_v49 = vadd.f32 %v250_v48, %v229_v47 }
 0x33d   :  { %450 = vtanh.f32 %v253_v49 }
 0x343   :  { %v451_v50 = vpop.eup %450 }
 0x344   :  { %v255_v51 = vadd.f32 %v451_v50, %v219_v43  ;;  %431 = vmatmul.msk.f32.vlgmr.msrb.gmra.mxu2 %vm49_vm0, %v451_v50 }
 0x3c7   :  { %v286_v56 = vpop.f32.mrf.mxu2 }
 0x3c8   :  { %v289_v57 = vadd.f32 %v286_v56, %v265_v55 }
 0x3ca   :  { %452 = vtanh.f32 %v289_v57 }
 0x3d0   :  { %v453_v58 = vpop.eup %452 }
 0x3d1   :  { %v291_v59 = vadd.f32 %v453_v58, %v255_v51  ;;  %434 = vmatmul.msk.f32.vlgmr.msrb.gmra.mxu3 %vm49_vm0, %v453_v58 }
 0x454   :  { %v322_v4 = vpop.f32.mrf.mxu3 }
 0x455   :  { %v325_v5 = vadd.f32 %v322_v4, %v301_v3 }
 0x457   :  { %454 = vtanh.f32 %v325_v5 }
 0x45d   :  { %v455_v6 = vpop.eup %454 }
 0x45e   :  { %v327_v7 = vadd.f32 %v455_v6, %v291_v59  ;;  %363 = vst.msk [vmem:[#allocation6] sm:$0x3] %vm362_vm2, %v455_v6 }
 0x45f   :  { %385 = dma.vmem_to_hbm [thread:$0]  %s381_s9, 32, %s383_s1, [#allocation7]  }
 0x460   :  { %v328_v8 = vmul.f32 0.125, %v327_v7 }
 0x462   :  { %435 = vmatmul.msk.f32.vlgmr.msra.gmra.mxu0 %vm49_vm0, %v328_v8 }
 0x4df   :  { %v357_v10 = vpop.f32.mrf.mxu0 }
 0x4e0   :  { %v358_v11 = vadd.f32 %v439_v9, %v357_v10 }
 0x4e2   :  { %361 = vst.msk [vmem:[#allocation4] sm:$0x3] %vm360_vm3, %v358_v11 }
 0x4e3   :  { %374 = dma.vmem_to_hbm [thread:$0]  %s370_s2, 32, %s372_s15, [#allocation5]  }
 0x4e4   :  { %518 = dma.done.wait [#allocation5], 32  }
 0x4e5   :  { %519 = vsyncadd [#allocation5], 4294967264 }
 0x4e6   :  { %520 = dma.done.wait [#allocation7], 32  }
 0x4e7   :  { %521 = vsyncadd [#allocation7], 4294967264 }
 0x4e8   :  { %394 = vsyncpa [#allocation5], 1 }
 0x4e9   :  { %395 = vsyncpa [#allocation7], 1 }

</bundles_post_ra>
